<compile_context>
chip_gen: v5e
topology: v5e:2x2
jax: 0.10.0
libtpu: 0.0.40
codegen_flags: <defaults>
</compile_context>

<pallas_src>
import functools
import math

import jax
import jax.numpy as jnp
from jax import lax
from jax.experimental import pallas as pl
from jax.experimental.pallas import tpu as pltpu

_LANE = 128


def _round_up(n, m):
    return ((n + m - 1) // m) * m


def _pick_tile(total, cap, unit=_LANE):
    """Largest multiple of `unit` that divides `total` (a multiple of `unit`)
    and is <= cap. Always succeeds (unit itself qualifies)."""
    n = total // unit
    best = 1
    for k in range(1, min(cap // unit, n) + 1):
        if n % k == 0:
            best = k
    return best * unit


# --------------------------------------------------------------------------
# Kernel 1: fused QKV projection (one bf16 MXU matmul per sequence tile).
# --------------------------------------------------------------------------
def _qkv_projection_kernel(x_ref, w_ref, q_ref, k_ref, v_ref, *, d_kq_p):
    # x_ref: (1, t, d_in_p)   w_ref: (d_in_p, 2*d_kq_p + d_v_p)
    qkv = jnp.dot(x_ref[0], w_ref[...], preferred_element_type=jnp.float32)
    q_ref[0] = qkv[:, :d_kq_p].astype(q_ref.dtype)          # Wq pre-scaled
    k_ref[0] = qkv[:, d_kq_p:2 * d_kq_p].astype(k_ref.dtype)
    v_ref[0] = qkv[:, 2 * d_kq_p:].astype(v_ref.dtype)


# --------------------------------------------------------------------------
# Kernel 2: flash attention over the pre-projected (and pre-scaled) Q/K/V.
# --------------------------------------------------------------------------
def _flash_attention_kernel(q_ref, k_ref, v_ref, o_ref,
                            m_sc, l_sc, acc_sc,
                            *, seq_len, tkv, needs_mask):
    ki = pl.program_id(2)

    @pl.when(ki == 0)
    def _init():
        m_sc[...] = jnp.full(m_sc.shape, -jnp.inf, dtype=m_sc.dtype)
        l_sc[...] = jnp.zeros(l_sc.shape, dtype=l_sc.dtype)
        acc_sc[...] = jnp.zeros(acc_sc.shape, dtype=acc_sc.dtype)

    # scores = q @ k^T as an MXU contraction (no explicit transpose); the
    # 1/sqrt(d_kq) scale was already folded into Wq at prep time.
    s = lax.dot_general(q_ref[0], k_ref[0],
                        dimension_numbers=(((1,), (1,)), ((), ())),
                        preferred_element_type=jnp.float32)      # (tq, tkv)

    if needs_mask:  # static: only when T was padded up to a 128 multiple
        col = ki * tkv + lax.broadcasted_iota(jnp.int32, s.shape, 1)
        s = jnp.where(col < seq_len, s, jnp.float32(-1e30))

    # Online (streaming) softmax in f32.
    m_prev = m_sc[...]
    m_new = jnp.maximum(m_prev, jnp.max(s, axis=-1, keepdims=True))
    alpha = jnp.exp(m_prev - m_new)
    p = jnp.exp(s - m_new)
    l_sc[...] = alpha * l_sc[...] + jnp.sum(p, axis=-1, keepdims=True)
    acc_sc[...] = alpha * acc_sc[...] + jnp.dot(
        p.astype(v_ref.dtype), v_ref[0], preferred_element_type=jnp.float32)
    m_sc[...] = m_new

    @pl.when(ki == pl.num_programs(2) - 1)
    def _finalize():
        # Exact division: this runs once per q-tile on a (tq, d_v_p) tile, so
        # the approximate EUP reciprocal bought no performance.
        o_ref[0] = (acc_sc[...] / l_sc[...]).astype(o_ref.dtype)


# --------------------------------------------------------------------------
# Wrapper
# --------------------------------------------------------------------------
def prepare_self_attention_params(w_query, w_key, w_value,
                                  *, matmul_dtype=jnp.bfloat16):
    """Build the fused, padded, scale-folded projection weight ONCE (hoisted
    out of the forward path)."""
    d_in, d_kq = w_query.shape
    d_v = w_value.shape[1]
    d_in_p = _round_up(d_in, _LANE)
    d_kq_p = _round_up(d_kq, _LANE)
    d_v_p = _round_up(d_v, _LANE)

    scale = 1.0 / math.sqrt(d_kq)  # original (unpadded) d_kq, as in the module
    wq = jnp.pad(w_query.astype(jnp.float32) * scale,
                 ((0, d_in_p - d_in), (0, d_kq_p - d_kq)))
    wk = jnp.pad(w_key.astype(jnp.float32),
                 ((0, d_in_p - d_in), (0, d_kq_p - d_kq)))
    wv = jnp.pad(w_value.astype(jnp.float32),
                 ((0, d_in_p - d_in), (0, d_v_p - d_v)))
    w_qkv = jnp.concatenate([wq, wk, wv], axis=1).astype(matmul_dtype)

    return dict(w_qkv=w_qkv, matmul_dtype=matmul_dtype,
                d_in=d_in, d_kq=d_kq, d_v=d_v,
                d_in_p=d_in_p, d_kq_p=d_kq_p, d_v_p=d_v_p)


def self_attention(x, params, *, tq_cap=512, tkv_cap=1024):
    """x: (B, T, d_in); returns (B, T, d_v). Matches PyTorch SelfAttention."""
    B, T, d_in = x.shape
    assert d_in == params["d_in"]
    d_in_p, d_kq_p, d_v_p = params["d_in_p"], params["d_kq_p"], params["d_v_p"]
    d_v = params["d_v"]
    mdt = params["matmul_dtype"]
    mdt_bytes = jnp.dtype(mdt).itemsize
    out_bytes = jnp.dtype(x.dtype).itemsize
    w_tot = 2 * d_kq_p + d_v_p

    # Sequence padded to a 128 multiple; tiles chosen as 128-multiples that
    # divide T_p (tq | tkv | T_p), so the grid always divides exactly and the
    # score tile stays bounded regardless of T.
    T_p = _round_up(T, _LANE)
    tkv = _pick_tile(T_p, tkv_cap)
    tq = _pick_tile(tkv, tq_cap)
    n_q, n_kv = T_p // tq, T_p // tkv
    needs_mask = (T_p != T)

    x_p = jnp.pad(x, ((0, 0), (0, T_p - T), (0, d_in_p - d_in))).astype(mdt)

    # -------------------- kernel 1: QKV projection --------------------
    proj_flops = 2 * B * T_p * d_in_p * w_tot
    proj_bytes = mdt_bytes * (B * T_p * d_in_p + d_in_p * w_tot + B * T_p * w_tot)
    q, k, v = pl.pallas_call(
        functools.partial(_qkv_projection_kernel, d_kq_p=d_kq_p),
        out_shape=(
            jax.ShapeDtypeStruct((B, T_p, d_kq_p), mdt),
            jax.ShapeDtypeStruct((B, T_p, d_kq_p), mdt),
            jax.ShapeDtypeStruct((B, T_p, d_v_p), mdt),
        ),
        grid_spec=pltpu.PrefetchScalarGridSpec(
            num_scalar_prefetch=0,
            grid=(B, n_kv),
            in_specs=[
                pl.BlockSpec((1, tkv, d_in_p), lambda b, i: (b, i, 0)),
                pl.BlockSpec((d_in_p, w_tot), lambda b, i: (0, 0)),
            ],
            out_specs=(
                pl.BlockSpec((1, tkv, d_kq_p), lambda b, i: (b, i, 0)),
                pl.BlockSpec((1, tkv, d_kq_p), lambda b, i: (b, i, 0)),
                pl.BlockSpec((1, tkv, d_v_p), lambda b, i: (b, i, 0)),
            ),
        ),
        compiler_params=pltpu.CompilerParams(
            dimension_semantics=("parallel", "parallel"),
            vmem_limit_bytes=48 * 1024 * 1024,
        ),
        cost_estimate=pl.CostEstimate(
            flops=int(proj_flops), transcendentals=0,
            bytes_accessed=int(proj_bytes)),
    )(x_p, params["w_qkv"])

    # -------------------- kernel 2: flash attention --------------------
    attn_flops = 2 * B * T_p * T_p * (d_kq_p + d_v_p)
    attn_bytes = (mdt_bytes * B * T_p * d_kq_p                       # q (once)
                  + n_q * mdt_bytes * B * T_p * (d_kq_p + d_v_p)     # k, v re-read per q-tile
                  + out_bytes * B * T_p * d_v_p)                     # output
    kernel = functools.partial(_flash_attention_kernel,
                               seq_len=T, tkv=tkv, needs_mask=needs_mask)

    out_p = pl.pallas_call(
        kernel,
        out_shape=jax.ShapeDtypeStruct((B, T_p, d_v_p), x.dtype),
        grid_spec=pltpu.PrefetchScalarGridSpec(
            num_scalar_prefetch=0,
            grid=(B, n_q, n_kv),
            in_specs=[
                # q tile: block index constant along ki -> fetched once per q-tile
                pl.BlockSpec((1, tq, d_kq_p), lambda b, qi, ki: (b, qi, 0)),
                # k / v tiles streamed along the kv (reduction) axis
                pl.BlockSpec((1, tkv, d_kq_p), lambda b, qi, ki: (b, ki, 0)),
                pl.BlockSpec((1, tkv, d_v_p), lambda b, qi, ki: (b, ki, 0)),
            ],
            out_specs=pl.BlockSpec((1, tq, d_v_p), lambda b, qi, ki: (b, qi, 0)),
            scratch_shapes=[
                pltpu.VMEM((tq, 1), jnp.float32),      # running max m
                pltpu.VMEM((tq, 1), jnp.float32),      # running denom l
                pltpu.VMEM((tq, d_v_p), jnp.float32),  # output accumulator
            ],
        ),
        compiler_params=pltpu.CompilerParams(
            dimension_semantics=("parallel", "parallel", "arbitrary"),
            vmem_limit_bytes=48 * 1024 * 1024,
        ),
        cost_estimate=pl.CostEstimate(
            flops=int(attn_flops),
            transcendentals=int(B * T_p * T_p),
            bytes_accessed=int(attn_bytes)),
    )(q, k, v)

    return out_p[:, :T, :d_v]


# --------------------------------------------------------------------------
# References
# --------------------------------------------------------------------------
def self_attention_ref(x, w_query, w_key, w_value):
    """Pure f32 reference (module semantics)."""
    q = jnp.einsum("btd,de->bte", x, w_query)
    k = jnp.einsum("btd,de->bte", x, w_key)
    v = jnp.einsum("btd,de->bte", x, w_value)
    s = jnp.einsum("bqe,bke->bqk", q, k) / jnp.sqrt(jnp.float32(w_query.shape[1]))
    w = jax.nn.softmax(s, axis=-1)
    return jnp.einsum("bqk,bkd->bqd", w, v)


def self_attention_ref_emulated(x, w_query, w_key, w_value,
                                matmul_dtype=jnp.bfloat16):
    """f32 reference mirroring the kernel's bf16-operand / f32-accumulate math."""
    cast = lambda a: a.astype(matmul_dtype).astype(jnp.float32)
    scale = 1.0 / math.sqrt(w_query.shape[1])
    xb = cast(x)
    q = cast(xb @ cast(w_query.astype(jnp.float32) * scale))
    k = cast(xb @ cast(w_key.astype(jnp.float32)))
    v = cast(xb @ cast(w_value.astype(jnp.float32)))
    s = jnp.einsum("bqe,bke->bqk", q, k)
    m = s.max(axis=-1, keepdims=True)
    e = jnp.exp(s - m)
    num = jnp.einsum("bqk,bkd->bqd", cast(e), v)
    den = e.sum(axis=-1, keepdims=True)
    return num / den


if __name__ == "__main__":
    d_in, d_kq, d_v = 4, 8, 8
    B, T = 2, 8

    key = jax.random.PRNGKey(0)
    kx, kq, kk, kv_ = jax.random.split(key, 4)

    x = jax.random.uniform(kx, (B, T, d_in), dtype=jnp.float32)
    W_query = jax.random.uniform(kq, (d_in, d_kq), dtype=jnp.float32)
    W_key = jax.random.uniform(kk, (d_in, d_kq), dtype=jnp.float32)
    W_value = jax.random.uniform(kv_, (d_in, d_v), dtype=jnp.float32)

    # Weight fusion / padding / scale-fold done once (hoisted out of forward).
    params = prepare_self_attention_params(W_query, W_key, W_value)

    out = jax.block_until_ready(self_attention(x, params))
    assert out.shape == (B, T, d_v)

    # Tight check against a reference that mirrors the kernel's bf16/f32 math.
    ref_emul = self_attention_ref_emulated(x, W_query, W_key, W_value)
    assert jnp.allclose(out, ref_emul, atol=5e-3, rtol=5e-3), \
        float(jnp.max(jnp.abs(out - ref_emul)))

    # Looser sanity check against the pure f32 module semantics (tolerance
    # accounts only for bf16 matmul-operand rounding).
    ref_f32 = self_attention_ref(x, W_query, W_key, W_value)
    assert jnp.allclose(out, ref_f32, atol=8e-2, rtol=8e-2), \
        float(jnp.max(jnp.abs(out - ref_f32)))

    print("KERNEL_OK")
</pallas_src>

<mosaic_0001>
module attributes {stable_mosaic.version = 11 : i64} {
  func.func @_qkv_projection_kernel(%arg0: i32, %arg1: i32, %arg2: memref<1x128x128xbf16, #tpu.memory_space<vmem>>, %arg3: memref<128x384xbf16, #tpu.memory_space<vmem>>, %arg4: memref<1x128x128xbf16, #tpu.memory_space<vmem>>, %arg5: memref<1x128x128xbf16, #tpu.memory_space<vmem>>, %arg6: memref<1x128x128xbf16, #tpu.memory_space<vmem>>) attributes {dimension_semantics = [#tpu.dimension_semantics<parallel>, #tpu.dimension_semantics<parallel>], iteration_bounds = array<i64: 2, 1>, scalar_prefetch = 0 : i64, scratch_operands = 0 : i64, tpu.core_type = #tpu.core_type<tc>, window_params = [{transform_indices = @transform_0, window_bounds = array<i64: 1, 128, 128>}, {pipeline_mode = #tpu.pipeline_mode<synchronous>, transform_indices = @transform_1, window_bounds = array<i64: 128, 384>}, {transform_indices = @transform_2, window_bounds = array<i64: 1, 128, 128>}, {transform_indices = @transform_3, window_bounds = array<i64: 1, 128, 128>}, {transform_indices = @transform_4, window_bounds = array<i64: 1, 128, 128>}]} {
    %c0 = arith.constant 0 : index
    %c0_0 = arith.constant 0 : index
    %c0_1 = arith.constant 0 : index
    %0 = vector.load %arg2[%c0, %c0_0, %c0_1] : memref<1x128x128xbf16, #tpu.memory_space<vmem>>, vector<1x128x128xbf16>
    %1 = vector.shape_cast %0 : vector<1x128x128xbf16> to vector<128x128xbf16>
    %c0_2 = arith.constant 0 : index
    %c0_3 = arith.constant 0 : index
    %2 = vector.load %arg3[%c0_2, %c0_3] : memref<128x384xbf16, #tpu.memory_space<vmem>>, vector<128x384xbf16>
    %cst = arith.constant dense<0.000000e+00> : vector<128x384xf32>
    %3 = tpu.matmul %1, %2, %cst {dimension_numbers = #tpu.dot_dimension_numbers<[1], [0], [0], [1], [0, 0, 1, 1], [], []>} : vector<128x128xbf16>, vector<128x384xbf16>, vector<128x384xf32> -> vector<128x384xf32>
    %4 = vector.extract_strided_slice %3 {offsets = [0, 0], sizes = [128, 128], strides = [1, 1]} : vector<128x384xf32> to vector<128x128xf32>
    %5 = arith.truncf %4 : vector<128x128xf32> to vector<128x128xbf16>
    %c0_4 = arith.constant 0 : index
    %c0_5 = arith.constant 0 : index
    %c0_6 = arith.constant 0 : index
    %6 = vector.load %arg4[%c0_4, %c0_5, %c0_6] : memref<1x128x128xbf16, #tpu.memory_space<vmem>>, vector<1x128x128xbf16>
    %7 = vector.shape_cast %6 : vector<1x128x128xbf16> to vector<128x128xbf16>
    %8 = vector.shape_cast %5 : vector<128x128xbf16> to vector<1x128x128xbf16>
    tpu.vector_store %arg4[%c0_4, %c0_5, %c0_6], %8 {strides = array<i32>} : memref<1x128x128xbf16, #tpu.memory_space<vmem>>, vector<1x128x128xbf16>,
    %9 = vector.extract_strided_slice %3 {offsets = [0, 128], sizes = [128, 128], strides = [1, 1]} : vector<128x384xf32> to vector<128x128xf32>
    %10 = arith.truncf %9 : vector<128x128xf32> to vector<128x128xbf16>
    %c0_7 = arith.constant 0 : index
    %c0_8 = arith.constant 0 : index
    %c0_9 = arith.constant 0 : index
    %11 = vector.load %arg5[%c0_7, %c0_8, %c0_9] : memref<1x128x128xbf16, #tpu.memory_space<vmem>>, vector<1x128x128xbf16>
    %12 = vector.shape_cast %11 : vector<1x128x128xbf16> to vector<128x128xbf16>
    %13 = vector.shape_cast %10 : vector<128x128xbf16> to vector<1x128x128xbf16>
    tpu.vector_store %arg5[%c0_7, %c0_8, %c0_9], %13 {strides = array<i32>} : memref<1x128x128xbf16, #tpu.memory_space<vmem>>, vector<1x128x128xbf16>,
    %14 = vector.extract_strided_slice %3 {offsets = [0, 256], sizes = [128, 128], strides = [1, 1]} : vector<128x384xf32> to vector<128x128xf32>
    %15 = arith.truncf %14 : vector<128x128xf32> to vector<128x128xbf16>
    %c0_10 = arith.constant 0 : index
    %c0_11 = arith.constant 0 : index
    %c0_12 = arith.constant 0 : index
    %16 = vector.load %arg6[%c0_10, %c0_11, %c0_12] : memref<1x128x128xbf16, #tpu.memory_space<vmem>>, vector<1x128x128xbf16>
    %17 = vector.shape_cast %16 : vector<1x128x128xbf16> to vector<128x128xbf16>
    %18 = vector.shape_cast %15 : vector<128x128xbf16> to vector<1x128x128xbf16>
    tpu.vector_store %arg6[%c0_10, %c0_11, %c0_12], %18 {strides = array<i32>} : memref<1x128x128xbf16, #tpu.memory_space<vmem>>, vector<1x128x128xbf16>,
    return
  }
  func.func @transform_0(%arg0: i32, %arg1: i32) -> (i32, i32, i32) {
    %c0_i32 = arith.constant 0 : i32
    %c0_i32_0 = arith.constant 0 : i32
    return %arg0, %arg1, %c0_i32 : i32, i32, i32
  }
  func.func @transform_1(%arg0: i32, %arg1: i32) -> (i32, i32) {
    %c0_i32 = arith.constant 0 : i32
    %c0_i32_0 = arith.constant 0 : i32
    %c0_i32_1 = arith.constant 0 : i32
    return %c0_i32, %c0_i32_0 : i32, i32
  }
  func.func @transform_2(%arg0: i32, %arg1: i32) -> (i32, i32, i32) {
    %c0_i32 = arith.constant 0 : i32
    %c0_i32_0 = arith.constant 0 : i32
    return %arg0, %arg1, %c0_i32 : i32, i32, i32
  }
  func.func @transform_3(%arg0: i32, %arg1: i32) -> (i32, i32, i32) {
    %c0_i32 = arith.constant 0 : i32
    %c0_i32_0 = arith.constant 0 : i32
    return %arg0, %arg1, %c0_i32 : i32, i32, i32
  }
  func.func @transform_4(%arg0: i32, %arg1: i32) -> (i32, i32, i32) {
    %c0_i32 = arith.constant 0 : i32
    %c0_i32_0 = arith.constant 0 : i32
    return %arg0, %arg1, %c0_i32 : i32, i32, i32
  }
}

</mosaic_0001>

<bundles_post_ra>
// kernel: tpu_custom_call.1
= control target key start
LH: loop header
LB: loop body
LE: loop exit
PB: predicated region body
PF: predicated region fallthrough
CT: control target
= control target key end

     0   :  { %s1960_s0 = inlined_call_operand.hbm [shape: bf16[2,128,128], index: 0, kind: input, shape index: {}]   ;;  %s1961_s1 = inlined_call_operand.hbm [shape: bf16[128,384], index: 1, kind: input, shape index: {}]   ;;  %s1962_s2 = inlined_call_operand.hbm [shape: bf16[2,128,128], index: 2, kind: output, shape index: {0}]   ;;  %s1963_s3 = inlined_call_operand.hbm [shape: bf16[2,128,128], index: 3, kind: output, shape index: {1}]   ;;  %s1964_s4 = inlined_call_operand.hbm [shape: bf16[2,128,128], index: 4, kind: output, shape index: {2}]  }
   0x1   :  { %1967 = sst [smem:[#allocation16_spill]] %s1961_s1 }
   0x2   :  { %10 = vsyncpa [#allocation3], 0 }
   0x3   :  { %12 = vsyncpa [#allocation3 + $0x1], 0 }
   0x4   :  { %13 = vsyncpa [#allocation6], 0 }
   0x5   :  { %14 = vsyncpa [#allocation4], 0 }
   0x6   :  { %16 = vsyncpa [#allocation4 + $0x1], 0 }
   0x7   :  { %17 = vsyncpa [#allocation9], 0 }
   0x8   :  { %19 = vsyncpa [#allocation9 + $0x1], 0  ;;  %s1661_s15 = smov 0   ;;  %s1663_s16 = smov 0  }
   0x9   :  { %s1665_s17 = smov 0   ;;  %s1667_s18 = smov 0  }
   0xa   :  { %s1669_s19 = smov 0   ;;  %s1671_s20 = smov 0  }
   0xb LB: > { %s1692_s21 = sadd.s32 4294967295, %s1627_s20   ;;  %s1965_s22 = sadd.s32 4294967294, %s1627_s20   ;;  %s1627_s20 = sphi %s1671_s20, %s25_s20   ;;  %s1623_s19 = sphi %s1669_s19, %s1981_s19   ;;  %s1619_s18 = sphi %s1667_s18, %s1980_s18   ;;  %s1615_s17 = sphi %s1665_s17, %s1979_s17   ;;  %s1611_s16 = sphi %s1663_s16, %s1978_s16   ;;  %s1607_s15 = sphi %s1661_s15, %s1977_s15  }
   0xc   : > { %p59_p0 = scmp.ne.s32.totalorder %s1611_s16, %s1607_s15  ;;  %p60_p1 = scmp.eq.s32.totalorder %s1692_s21, 0 }
   0xd   : > { %p106_p2 = scmp.eq.s32.totalorder %s1692_s21, 1  ;;  %p112_p3 = scmp.eq.s32.totalorder %s1965_s22, 1 }
   0xe   : > { %p1703_p4 = por %p60_p1, %p59_p0  ;;  %p980_p5 = scmp.ge.s32.totalorder %s1627_s20, 1 }
   0xf   : > { %p1708_p6 = por %p112_p3, %p59_p0  ;;  %p175_p7 = scmp.lt.s32.totalorder %s1627_s20, 3 }
  0x10   : > { %s1970_s1 = sld [smem:[#allocation16_spill]]  ;;  %s1629_s29 = smov [#allocation5]  }
  0x11   : > { %p1716_p8 = pnand %p980_p5, %p175_p7  ;;  %s188_s30 = sshll.u32 %s1629_s29, 4  ;;  %s189_s30 = int_to_ptr.vmem [resolvable:$true] %s188_s30 }
  0x12   : > { %p982_p11 = scmp.ge.s32.totalorder %s1627_s20, 2  ;;  %s1630_s5 = smov 192  }
  0x13   : > { %p1344_p9 = pneg %p1716_p8  ;;  %s1631_s6 = smov 12  }
  0x14   : > { %s37_s7 = sadd.s32 1, %s1623_s19  ;;  %s46_s8 = sadd.s32 1, %s1615_s17 }
  0x15   : > { %p1345_p10 = pnand %p1344_p9, %p60_p1  ;;  %p39_p12 = scmp.ge.s32.totalorder %s37_s7, 2 }
  0x16   : > { %s186_s27 = sshll.u32 %s1970_s1, 4  ;;  %p53_p13 = scmp.ne.s32.totalorder %s1615_s17, %s1611_s16  ;;  %s187_s27 = int_to_ptr.hbm [resolvable:$true] %s186_s27 }
  0x17   : > { %1347 = dma.hbm_to_vmem [thread:$0]  (!%p1345_p10), %s187_s27, 3072, %s189_s30, [#allocation6], %s1630_s5, %s1630_s5, %s1631_s6  }
  0x18   : > { %p54_p0 = scmp.eq.s32.totalorder %s1627_s20, 0  ;;  %s1983_s7 = smov (%p39_p12, %s37_s7), 0 }
  0x19   : > { %1972 = sst [smem:[#allocation15_spill]] %s1983_s7  ;;  %p1738_p5 = por %p106_p2, %p53_p13 }
  0x1a   : > { %p1732_p3 = por %p54_p0, %p53_p13  ;;  %s41_s11 = ssub.s32 %s1623_s19, %s1983_s7 }
  0x1b   : > { %p1363_p7 = scmp.lt.s32.totalorder %s1627_s20, 2  ;;  %p44_p9 = scmp.eq.s32.totalorder %s41_s11, 0 }
  0x1c   : > { %s202_s12 = sand.u32 1, %s1615_s17   ;;  %s1131_s25 = sshll.u32 %s1623_s19, 6 }
  0x1d   : > { %s983_s13 = sshll.u32 %s202_s12, 6  ;;  %s213_s29 = scalar_lea.hbm %s1960_s0, %s1131_s25 }
  0x1e   : > { %s1747_s14 = scalar_select %p44_p9, %s1615_s17, %s46_s8  }
  0x1f   : > { %s206_s30 = scalar_lea.vmem [#allocation2], %s983_s13  ;;  %s214_s6 = sshll.u32 %s213_s29, 4  ;;  %s215_s6 = int_to_ptr.hbm [resolvable:$true] %s214_s6 }
  0x20   : > { %s216_s5 = sshll.u32 %s206_s30, 4  ;;  %p1349_p2 = pnand %p1363_p7, %p1732_p3  ;;  %s217_s5 = int_to_ptr.vmem [resolvable:$true] %s216_s5 }
  0x21   : > { %s203_s22 = scalar_lea.sflag [#allocation3], %s202_s12  ;;  %s1632_s1 = smov 64  }
  0x22   : > { %s1633_s7 = smov 4   ;;  %228 = sbr.rel (%p1716_p8) target bundleno = 321 (0x141), region = 28 }
  0x23   : > { %1351 = dma.hbm_to_vmem [thread:$0]  (!%p1349_p2), %s215_s6, 1024, %s217_s5, %s203_s22, %s1632_s1, %s1632_s1, %s1633_s7  }
  0x24   : > { %s1758_s8 = sand.u32 (!%p1716_p8), 1, %s1611_s16  }
  0x25   : > { %s1761_s11 = sshll.u32 (!%p1716_p8), %s1758_s8, 6  ;;  %s231_s13 = scalar_lea.sflag (!%p1716_p8), [#allocation3], %s1758_s8 }
  0x26   : > { %s1765_s25 = scalar_lea.vmem (!%p1716_p8), [#allocation2], %s1761_s11 }
  0x27   : > { %1590 = dma.done.wait (%p1703_p4), %s231_s13, 1024  }
  0x28   : > { %1592 = vsyncadd (%p1703_p4), %s231_s13, 4294966272 }
  0x29   : > { %1594 = dma.done.wait (%p60_p1), [#allocation6], 3072  }
  0x2a   : > { %1596 = vsyncadd (%p60_p1), [#allocation6], 4294964224  ;;  %v1110_v0 = vld [vmem:[#allocation5 + $0xa8] sm:$0xf]  ;;  %v1162_v1 = vld [vmem:[#allocation5 + $0xb0] sm:$0xf0] }
  0x2b   : > { %v1161_v2 = vld [vmem:[#allocation5 + $0xac] sm:$0xf]  ;;  %v1111_v3 = vor.u32 %v1162_v1, %v1110_v0  ;;  %v1112_v4 = vld [vmem:[#allocation5 + $0xb4] sm:$0xf0]  ;;  %v1118_v5 = vld [vmem:[#allocation5 + $0xb0] sm:$0xf] }
  0x2c   : > { %v1163_v6 = vld [vmem:[#allocation5 + $0xb8] sm:$0xf0]  ;;  %v1775_v7 = vor.u32 %v1161_v2, %v1112_v4  ;;  %v1098_v9 = vld [vmem:[#allocation5 + $0x90] sm:$0xf]  ;;  %v1158_v11 = vld [vmem:[#allocation5 + $0x94] sm:$0xf] }
  0x2d   : > { %v1777_v8 = vor.u32 %v1163_v6, %v1118_v5  ;;  %v1159_v10 = vld [vmem:[#allocation5 + $0x98] sm:$0xf0]  ;;  %503 = vmatpush.bf16.msra.mxu0 %v1111_v3  ;;  %1308 = vmatpush.bf16.msra.mxu3 %v1111_v3  ;;  %v1100_v13 = vld [vmem:[#allocation5 + $0x9c] sm:$0xf0]  ;;  %v1106_v14 = vld [vmem:[#allocation5 + $0x98] sm:$0xf] }
  0x2e   : > { %v1099_v12 = vor.u32 %v1159_v10, %v1098_v9  ;;  %v1160_v15 = vld [vmem:[#allocation5 + $0xa0] sm:$0xf0]  ;;  %552 = vmatpush.bf16.msra.mxu1 %v1775_v7  ;;  %v1781_v16 = vor.u32 %v1158_v11, %v1100_v13  ;;  %v1086_v18 = vld [vmem:[#allocation5 + $0x78] sm:$0xf]  ;;  %v1155_v20 = vld [vmem:[#allocation5 + $0x7c] sm:$0xf] }
  0x2f   : > { %601 = vmatpush.bf16.msra.mxu2 %v1777_v8  ;;  %v1783_v17 = vor.u32 %v1160_v15, %v1106_v14  ;;  %v1156_v19 = vld [vmem:[#allocation5 + $0x80] sm:$0xf0]  ;;  %v1088_v21 = vld [vmem:[#allocation5 + $0x84] sm:$0xf0]  ;;  %v1094_v22 = vld [vmem:[#allocation5 + $0x80] sm:$0xf] }
  0x30   : > { %v1157_v23 = vld [vmem:[#allocation5 + $0x88] sm:$0xf0]  ;;  %v1087_v24 = vor.u32 %v1156_v19, %v1086_v18  ;;  %v1787_v25 = vor.u32 %v1155_v20, %v1088_v21  ;;  %v1074_v27 = vld [vmem:[#allocation5 + $0x60] sm:$0xf]  ;;  %v1152_v29 = vld [vmem:[#allocation5 + $0x64] sm:$0xf] }
  0x31   : > { %504 = vmatpush.bf16.msra.mxu0 %v1099_v12  ;;  %1309 = vmatpush.bf16.msra.mxu3 %v1099_v12  ;;  %v1789_v26 = vor.u32 %v1157_v23, %v1094_v22  ;;  %v1153_v28 = vld [vmem:[#allocation5 + $0x68] sm:$0xf0]  ;;  %v1076_v30 = vld [vmem:[#allocation5 + $0x6c] sm:$0xf0]  ;;  %v1082_v31 = vld [vmem:[#allocation5 + $0x68] sm:$0xf] }
  0x32   : > { %553 = vmatpush.bf16.msra.mxu1 %v1781_v16  ;;  %v1154_v32 = vld [vmem:[#allocation5 + $0x70] sm:$0xf0]  ;;  %v1075_v33 = vor.u32 %v1153_v28, %v1074_v27  ;;  %v1793_v34 = vor.u32 %v1152_v29, %v1076_v30  ;;  %v1062_v36 = vld [vmem:[#allocation5 + $0x48] sm:$0xf]  ;;  %v1149_v38 = vld [vmem:[#allocation5 + $0x4c] sm:$0xf] }
  0x33   : > { %602 = vmatpush.bf16.msra.mxu2 %v1783_v17  ;;  %v1795_v35 = vor.u32 %v1154_v32, %v1082_v31  ;;  %v1150_v37 = vld [vmem:[#allocation5 + $0x50] sm:$0xf0]  ;;  %v1064_v39 = vld [vmem:[#allocation5 + $0x54] sm:$0xf0]  ;;  %v1070_v40 = vld [vmem:[#allocation5 + $0x50] sm:$0xf] }
  0x34   : > { %v1151_v41 = vld [vmem:[#allocation5 + $0x58] sm:$0xf0]  ;;  %v1063_v42 = vor.u32 %v1150_v37, %v1062_v36  ;;  %v1067_v43 = vor.u32 %v1149_v38, %v1064_v39  ;;  %v1050_v45 = vld [vmem:[#allocation5 + $0x30] sm:$0xf]  ;;  %v1146_v47 = vld [vmem:[#allocation5 + $0x34] sm:$0xf] }
  0x35   : > { %505 = vmatpush.bf16.msra.mxu0 %v1087_v24  ;;  %1310 = vmatpush.bf16.msra.mxu3 %v1087_v24  ;;  %v1799_v44 = vor.u32 %v1151_v41, %v1070_v40  ;;  %v1147_v46 = vld [vmem:[#allocation5 + $0x38] sm:$0xf0]  ;;  %v1052_v48 = vld [vmem:[#allocation5 + $0x3c] sm:$0xf0]  ;;  %v1058_v49 = vld [vmem:[#allocation5 + $0x38] sm:$0xf] }
  0x36   : > { %554 = vmatpush.bf16.msra.mxu1 %v1787_v25  ;;  %v1148_v50 = vld [vmem:[#allocation5 + $0x40] sm:$0xf0]  ;;  %v1051_v51 = vor.u32 %v1147_v46, %v1050_v45  ;;  %v1055_v52 = vor.u32 %v1146_v47, %v1052_v48  ;;  %v1038_v54 = vld [vmem:[#allocation5 + $0x18] sm:$0xf]  ;;  %v1143_v56 = vld [vmem:[#allocation5 + $0x1c] sm:$0xf] }
  0x37   : > { %603 = vmatpush.bf16.msra.mxu2 %v1789_v26  ;;  %v1802_v53 = vor.u32 %v1148_v50, %v1058_v49  ;;  %v1144_v55 = vld [vmem:[#allocation5 + $0x20] sm:$0xf0]  ;;  %v1040_v57 = vld [vmem:[#allocation5 + $0x24] sm:$0xf0]  ;;  %v1046_v58 = vld [vmem:[#allocation5 + $0x20] sm:$0xf] }
  0x38   : > { %v1145_v59 = vld [vmem:[#allocation5 + $0x28] sm:$0xf0]  ;;  %v1039_v60 = vor.u32 %v1144_v55, %v1038_v54  ;;  %v1043_v61 = vor.u32 %v1143_v56, %v1040_v57  ;;  %v1026_v63 = vld [vmem:[#allocation5] sm:$0xf]  ;;  %v1140_v1 = vld [vmem:[#allocation5 + $0x4] sm:$0xf] }
  0x39   : > { %506 = vmatpush.bf16.msra.mxu0 %v1075_v33  ;;  %1311 = vmatpush.bf16.msra.mxu3 %v1075_v33  ;;  %v1047_v62 = vor.u32 %v1145_v59, %v1046_v58  ;;  %v1141_v0 = vld [vmem:[#allocation5 + $0x8] sm:$0xf0]  ;;  %v1028_v2 = vld [vmem:[#allocation5 + $0xc] sm:$0xf0]  ;;  %v1034_v3 = vld [vmem:[#allocation5 + $0x8] sm:$0xf] }
  0x3a   : > { %555 = vmatpush.bf16.msra.mxu1 %v1793_v34  ;;  %v1142_v4 = vld [vmem:[#allocation5 + $0x10] sm:$0xf0]  ;;  %v1027_v5 = vor.u32 %v1141_v0, %v1026_v63  ;;  %v1031_v6 = vor.u32 %v1140_v1, %v1028_v2  ;;  %v1132_v10 = vld [vmem:[%s1765_s25] sm:$0xff]  ;;  %v1133_v12 = vld [vmem:[%s1765_s25 + $0x8] sm:$0xff]  ;;  %s1824_s1 = scalar_lea.vmem [#allocation7], %s1761_s11  ;;  %s1828_s22 = scalar_lea.vmem [#allocation8], %s1761_s11 }
  0x3b   : > { %604 = vmatpush.bf16.msra.mxu2 %v1795_v35  ;;  %v1035_v9 = vor.u32 %v1142_v4, %v1034_v3  ;;  %v1138_v11 = vld [vmem:[%s1765_s25 + $0x30] sm:$0xff]  ;;  %v1139_v13 = vld [vmem:[%s1765_s25 + $0x38] sm:$0xff]  ;;  %v1137_v15 = vld [vmem:[%s1765_s25 + $0x28] sm:$0xff]  ;;  %s1833_s23 = scalar_lea.vmem [#allocation10], %s1761_s11  ;;  %s1164_s28 = sshll.u32 %s1619_s18, 6 }
  0x3c   : > { %v1135_v14 = vld [vmem:[%s1765_s25 + $0x18] sm:$0xff]  ;;  %s771_s7 = sshll.u32 %s1824_s1, 4  ;;  %s790_s9 = sshll.u32 %s1828_s22, 4  ;;  %s1862_s7 = int_to_ptr.vmem [resolvable:$true] %s771_s7  ;;  %s1864_s9 = int_to_ptr.vmem [resolvable:$true] %s790_s9 }
  0x3d   : > { %507 = vmatpush.bf16.msra.mxu0 %v1063_v42  ;;  %1312 = vmatpush.bf16.msra.mxu3 %v1063_v42  ;;  %s789_s27 = scalar_lea.hbm %s1963_s3, %s1164_s28  ;;  %s751_s29 = sand.u32 1, %s1692_s21  }
  0x3e   : > { %556 = vmatpush.bf16.msra.mxu1 %v1067_v43  ;;  %s770_s6 = scalar_lea.hbm %s1962_s2, %s1164_s28  ;;  %s1866_s18 = sshll.u32 %s789_s27, 4  ;;  %s793_s18 = int_to_ptr.hbm [resolvable:$true] %s1866_s18 }
  0x3f   : > { %605 = vmatpush.bf16.msra.mxu2 %v1799_v44  ;;  %s1868_s11 = sshll.u32 %s770_s6, 4  ;;  %s809_s12 = sshll.u32 %s1833_s23, 4  ;;  %s774_s11 = int_to_ptr.hbm [resolvable:$true] %s1868_s11  ;;  %s810_s12 = int_to_ptr.vmem [resolvable:$true] %s809_s12 }
  0x40   : > { %s1880_s27 = scalar_lea.sflag [#allocation9], %s751_s29  ;;  %s1495_s30 = sshra.s32 %s793_s18, 4  ;;  %s1496_s30 = int_to_ptr.hbm [resolvable:$true] %s1495_s30 }
  0x41   : > { %508 = vmatpush.bf16.msra.mxu0 %v1051_v51  ;;  %1313 = vmatpush.bf16.msra.mxu3 %v1051_v51  ;;  %s1497_s5 = scalar_lea.hbm %s1496_s30, 64  ;;  %p1502_p10 = scmp.lt.s32.totalorder %s1496_s30, %s1963_s3 }
  0x42   : > { %557 = vmatpush.bf16.msra.mxu1 %v1055_v52  ;;  %p1498_p1 = scmp.ne.s32.totalorder %s1496_s30, %s1497_s5 }
  0x43   : > { %606 = vmatpush.bf16.msra.mxu2 %v1802_v53 }
  0x44   : > { %p1499_p4 = pnand %p1498_p1, %p1738_p5 }
  0x45   : > { %509 = vmatpush.bf16.msra.mxu0 %v1039_v60  ;;  %1314 = vmatpush.bf16.msra.mxu3 %v1039_v60 }
  0x46   : > { %558 = vmatpush.bf16.msra.mxu1 %v1043_v61  ;;  %p1500_p8 = pneg %p1499_p4 }
  0x47   : > { %607 = vmatpush.bf16.msra.mxu2 %v1047_v62 }
  0x49   : > { %510 = vmatpush.bf16.msra.mxu0 %v1027_v5  ;;  %1315 = vmatpush.bf16.msra.mxu3 %v1027_v5 }
  0x4a   : > { %559 = vmatpush.bf16.msra.mxu1 %v1031_v6 }
  0x4b   : > { %608 = vmatpush.bf16.msra.mxu2 %v1035_v9 }
  0x4c   : > { %511 = vmatmul.bf16.vlgmr.msra.gmra.mxu0 %v1132_v10  ;;  %541 = vmatmul.bf16.vlgmr.msra.gmra.mxu3 %v1138_v11 }
  0x4d   : > { %1316 = vmatpush.bf16.msrb.mxu3 %v1775_v7  ;;  %560 = vmatmul.bf16.vlgmr.msra.gmra.mxu1 %v1132_v10  ;;  %v1134_v7 = vld [vmem:[%s1765_s25 + $0x10] sm:$0xff] }
  0x4e   : > { %609 = vmatmul.bf16.vlgmr.msra.gmra.mxu2 %v1132_v10 }
  0x51   : > { %1317 = vmatpush.bf16.msrb.mxu3 %v1781_v16 }
  0x55   : > { %1318 = vmatpush.bf16.msrb.mxu3 %v1787_v25 }
  0x59   : > { %1319 = vmatpush.bf16.msrb.mxu3 %v1793_v34 }
  0x5c   : > { %516 = vmatmul.bf16.gmra.mxu0 %v1133_v12  ;;  %546 = vmatmul.bf16.gmra.mxu3 %v1139_v13 }
  0x5d   : > { %1320 = vmatpush.bf16.msrb.mxu3 %v1067_v43  ;;  %565 = vmatmul.bf16.gmra.mxu1 %v1133_v12 }
  0x5e   : > { %614 = vmatmul.bf16.gmra.mxu2 %v1133_v12 }
  0x61   : > { %1321 = vmatpush.bf16.msrb.mxu3 %v1055_v52 }
  0x65   : > { %1322 = vmatpush.bf16.msrb.mxu3 %v1043_v61 }
  0x69   : > { %1323 = vmatpush.bf16.msrb.mxu3 %v1031_v6 }
  0x6c   : > { %521 = vmatmul.bf16.gmra.mxu0 %v1134_v7  ;;  %590 = vmatmul.bf16.vlgmr.msrb.gmra.mxu3 %v1138_v11 }
  0x6d   : > { %1324 = vmatpush.bf16.msra.mxu3 %v1777_v8  ;;  %570 = vmatmul.bf16.gmra.mxu1 %v1134_v7  ;;  %v1136_v8 = vld [vmem:[%s1765_s25 + $0x20] sm:$0xff]  ;;  %s808_s25 = scalar_lea.hbm %s1964_s4, %s1164_s28  ;;  %s1501_s28 = scalar_lea.hbm %s1963_s3, 128 }
  0x6e   : > { %619 = vmatmul.bf16.gmra.mxu2 %v1134_v7  ;;  %s1878_s26 = sshll.u32 %s808_s25, 4  ;;  %p1503_p12 = scmp.lt.s32.totalorder %s1501_s28, %s1497_s5  ;;  %s812_s26 = int_to_ptr.hbm [resolvable:$true] %s1878_s26 }
  0x70   : > { %p1504_p13 = por %p1503_p12, %p1502_p10 }
  0x71   : > { %1325 = vmatpush.bf16.msra.mxu3 %v1783_v17 }
  0x72   : > { %p1505_p0 = pnand %p1504_p13, %p1500_p8 }
  0x75   : > { %1326 = vmatpush.bf16.msra.mxu3 %v1789_v26 }
  0x79   : > { %1327 = vmatpush.bf16.msra.mxu3 %v1795_v35 }
  0x7c   : > { %526 = vmatmul.bf16.gmra.mxu0 %v1135_v14  ;;  %595 = vmatmul.bf16.gmra.mxu3 %v1139_v13 }
  0x7d   : > { %1328 = vmatpush.bf16.msra.mxu3 %v1799_v44  ;;  %575 = vmatmul.bf16.gmra.mxu1 %v1135_v14 }
  0x7e   : > { %624 = vmatmul.bf16.gmra.mxu2 %v1135_v14 }
  0x81   : > { %1329 = vmatpush.bf16.msra.mxu3 %v1802_v53 }
  0x85   : > { %1330 = vmatpush.bf16.msra.mxu3 %v1047_v62 }
  0x89   : > { %1331 = vmatpush.bf16.msra.mxu3 %v1035_v9 }
  0x8c   : > { %531 = vmatmul.bf16.gmra.mxu0 %v1136_v8  ;;  %639 = vmatmul.bf16.vlgmr.msra.gmra.mxu3 %v1138_v11 }
  0x8d   : > { %580 = vmatmul.bf16.gmra.mxu1 %v1136_v8 }
  0x8e   : > { %629 = vmatmul.bf16.gmra.mxu2 %v1136_v8 }
  0x9c   : > { %536 = vmatmul.bf16.gmra.mxu0 %v1137_v15  ;;  %644 = vmatmul.bf16.gmra.mxu3 %v1139_v13 }
  0x9d   : > { %585 = vmatmul.bf16.gmra.mxu1 %v1137_v15 }
  0x9e   : > { %634 = vmatmul.bf16.gmra.mxu2 %v1137_v15 }
  0xc9   : > { %v512_v16 = vpop.f32.mrf.mxu0 }
  0xca   : > { %v561_v17 = vpop.f32.mrf.mxu1 }
  0xcf   : > { %v542_v18 = vpop.f32.mrf.mxu3 }
  0xd1   : > { %v610_v19 = vpop.f32.mrf.mxu2  ;;  %v514_v20 = vpop.f32.mrf.mxu0 }
  0xd2   : > { %v1170_v21 = vpack.c.bf16 %v514_v20, %v512_v16  ;;  %v563_v22 = vpop.f32.mrf.mxu1 }
  0xd3   : > { %v1210_v23 = vpack.c.bf16 %v563_v22, %v561_v17 }
  0xd4   : > { %1171 = vst [vmem:[%s1824_s1] sm:$0xff] %v1170_v21  }
  0xd5   : > { %1211 = vst [vmem:[%s1828_s22] sm:$0xff] %v1210_v23  }
  0xd7   : > { %v544_v24 = vpop.f32.mrf.mxu3 }
  0xd8   : > { %v1200_v25 = vpack.c.bf16 %v544_v24, %v542_v18 }
  0xd9   : > { %v612_v26 = vpop.f32.mrf.mxu2  ;;  %v517_v28 = vpop.f32.mrf.mxu0 }
  0xda   : > { %v1250_v27 = vpack.c.bf16 %v612_v26, %v610_v19  ;;  %1292 = vst [vmem:[%s1824_s1 + $0x30] sm:$0xff] %v1200_v25   ;;  %v566_v29 = vpop.f32.mrf.mxu1 }
  0xdc   : > { %1251 = vst [vmem:[%s1833_s23] sm:$0xff] %v1250_v27  }
  0xdf   : > { %v547_v30 = vpop.f32.mrf.mxu3 }
  0xe1   : > { %v615_v31 = vpop.f32.mrf.mxu2  ;;  %v519_v32 = vpop.f32.mrf.mxu0 }
  0xe2   : > { %v1175_v33 = vpack.c.bf16 %v519_v32, %v517_v28  ;;  %v568_v34 = vpop.f32.mrf.mxu1 }
  0xe3   : > { %v1215_v35 = vpack.c.bf16 %v568_v34, %v566_v29 }
  0xe4   : > { %1287 = vst [vmem:[%s1824_s1 + $0x8] sm:$0xff] %v1175_v33  }
  0xe5   : > { %1294 = vst [vmem:[%s1828_s22 + $0x8] sm:$0xff] %v1215_v35  }
  0xe7   : > { %v549_v36 = vpop.f32.mrf.mxu3 }
  0xe8   : > { %v1205_v37 = vpack.c.bf16 %v549_v36, %v547_v30 }
  0xe9   : > { %v617_v38 = vpop.f32.mrf.mxu2  ;;  %v522_v40 = vpop.f32.mrf.mxu0 }
  0xea   : > { %v1255_v39 = vpack.c.bf16 %v617_v38, %v615_v31  ;;  %1293 = vst [vmem:[%s1824_s1 + $0x38] sm:$0xff] %v1205_v37   ;;  %v571_v41 = vpop.f32.mrf.mxu1 }
  0xec   : > { %1301 = vst [vmem:[%s1833_s23 + $0x8] sm:$0xff] %v1255_v39  }
  0xef   : > { %v591_v42 = vpop.f32.mrf.mxu3 }
  0xf1   : > { %v620_v43 = vpop.f32.mrf.mxu2  ;;  %v524_v44 = vpop.f32.mrf.mxu0 }
  0xf2   : > { %v1180_v45 = vpack.c.bf16 %v524_v44, %v522_v40  ;;  %v573_v46 = vpop.f32.mrf.mxu1 }
  0xf3   : > { %v1220_v47 = vpack.c.bf16 %v573_v46, %v571_v41 }
  0xf4   : > { %1288 = vst [vmem:[%s1824_s1 + $0x10] sm:$0xff] %v1180_v45  }
  0xf5   : > { %1295 = vst [vmem:[%s1828_s22 + $0x10] sm:$0xff] %v1220_v47  }
  0xf7   : > { %v593_v48 = vpop.f32.mrf.mxu3 }
  0xf8   : > { %v1240_v49 = vpack.c.bf16 %v593_v48, %v591_v42 }
  0xf9   : > { %v622_v50 = vpop.f32.mrf.mxu2  ;;  %v527_v52 = vpop.f32.mrf.mxu0 }
  0xfa   : > { %v1260_v51 = vpack.c.bf16 %v622_v50, %v620_v43  ;;  %1299 = vst [vmem:[%s1828_s22 + $0x30] sm:$0xff] %v1240_v49   ;;  %v576_v53 = vpop.f32.mrf.mxu1 }
  0xfc   : > { %1302 = vst [vmem:[%s1833_s23 + $0x10] sm:$0xff] %v1260_v51  }
  0xff   : > { %v596_v54 = vpop.f32.mrf.mxu3 }
 0x101   : > { %v625_v55 = vpop.f32.mrf.mxu2  ;;  %v529_v56 = vpop.f32.mrf.mxu0 }
 0x102   : > { %v1185_v57 = vpack.c.bf16 %v529_v56, %v527_v52  ;;  %v578_v58 = vpop.f32.mrf.mxu1 }
 0x103   : > { %v1225_v59 = vpack.c.bf16 %v578_v58, %v576_v53 }
 0x104   : > { %1289 = vst [vmem:[%s1824_s1 + $0x18] sm:$0xff] %v1185_v57  }
 0x105   : > { %1296 = vst [vmem:[%s1828_s22 + $0x18] sm:$0xff] %v1225_v59  }
 0x107   : > { %v598_v60 = vpop.f32.mrf.mxu3 }
 0x108   : > { %v1245_v61 = vpack.c.bf16 %v598_v60, %v596_v54 }
 0x109   : > { %v627_v62 = vpop.f32.mrf.mxu2  ;;  %v532_v0 = vpop.f32.mrf.mxu0 }
 0x10a   : > { %v1265_v63 = vpack.c.bf16 %v627_v62, %v625_v55  ;;  %1300 = vst [vmem:[%s1828_s22 + $0x38] sm:$0xff] %v1245_v61   ;;  %v581_v1 = vpop.f32.mrf.mxu1 }
 0x10c   : > { %1303 = vst [vmem:[%s1833_s23 + $0x18] sm:$0xff] %v1265_v63  }
 0x10f   : > { %v640_v2 = vpop.f32.mrf.mxu3 }
 0x111   : > { %v630_v3 = vpop.f32.mrf.mxu2  ;;  %v534_v4 = vpop.f32.mrf.mxu0 }
 0x112   : > { %v1190_v5 = vpack.c.bf16 %v534_v4, %v532_v0  ;;  %v583_v6 = vpop.f32.mrf.mxu1 }
 0x113   : > { %v1230_v9 = vpack.c.bf16 %v583_v6, %v581_v1 }
 0x114   : > { %1290 = vst [vmem:[%s1824_s1 + $0x20] sm:$0xff] %v1190_v5  }
 0x115   : > { %1297 = vst [vmem:[%s1828_s22 + $0x20] sm:$0xff] %v1230_v9  }
 0x117   : > { %v642_v10 = vpop.f32.mrf.mxu3 }
 0x118   : > { %v1280_v12 = vpack.c.bf16 %v642_v10, %v640_v2 }
 0x119   : > { %v632_v11 = vpop.f32.mrf.mxu2  ;;  %v537_v7 = vpop.f32.mrf.mxu0 }
 0x11a   : > { %v1270_v13 = vpack.c.bf16 %v632_v11, %v630_v3  ;;  %1306 = vst [vmem:[%s1833_s23 + $0x30] sm:$0xff] %v1280_v12   ;;  %v586_v14 = vpop.f32.mrf.mxu1 }
 0x11c   : > { %1304 = vst [vmem:[%s1833_s23 + $0x20] sm:$0xff] %v1270_v13  }
 0x11f   : > { %v645_v8 = vpop.f32.mrf.mxu3 }
 0x121   : > { %v635_v15 = vpop.f32.mrf.mxu2  ;;  %v539_v16 = vpop.f32.mrf.mxu0 }
 0x122   : > { %v1195_v17 = vpack.c.bf16 %v539_v16, %v537_v7  ;;  %v588_v18 = vpop.f32.mrf.mxu1 }
 0x123   : > { %v1235_v19 = vpack.c.bf16 %v588_v18, %v586_v14 }
 0x124   : > { %1291 = vst [vmem:[%s1824_s1 + $0x28] sm:$0xff] %v1195_v17  }
 0x125   : > { %1298 = vst [vmem:[%s1828_s22 + $0x28] sm:$0xff] %v1235_v19  }
 0x126   : > { %1508 = shalt.err (!%p1505_p0)
}
 0x127   : > { %s1634_s22 = smov 64   ;;  %s1635_s29 = smov 4   ;;  %v647_v20 = vpop.f32.mrf.mxu3 }
 0x128   : > { %1339 = dma.vmem_to_hbm [thread:$0]  (%p1738_p5), %s1864_s9, 1024, %s793_s18, %s1880_s27, %s1634_s22, %s1634_s22, %s1635_s29  }
 0x129   : > { %s747_s25 = scalar_lea.sflag [#allocation4], %s1758_s8  ;;  %s1523_s30 = sshra.s32 %s774_s11, 4  ;;  %s1524_s30 = int_to_ptr.hbm [resolvable:$true] %s1523_s30 }
 0x12a   : > { %s1525_s5 = scalar_lea.hbm %s1524_s30, 64  ;;  %s1529_s28 = scalar_lea.hbm %s1962_s2, 128 }
 0x12b   : > { %p1526_p3 = scmp.ne.s32.totalorder %s1524_s30, %s1525_s5  ;;  %p1530_p2 = scmp.lt.s32.totalorder %s1524_s30, %s1962_s2 }
 0x12c   : > { %p1531_p1 = scmp.lt.s32.totalorder %s1529_s28, %s1525_s5 }
 0x12d   : > { %p1527_p7 = pnand %p1526_p3, %p1738_p5 }
 0x12e   : > { %p1532_p4 = por %p1531_p1, %p1530_p2 }
 0x12f   : > { %p1528_p9 = pneg %p1527_p7 }
 0x131   : > { %p1533_p8 = pnand %p1532_p4, %p1528_p9 }
 0x133   : > { %1536 = shalt.err (!%p1533_p8)
}
 0x134   : > { %1338 = dma.vmem_to_hbm [thread:$0]  (%p1738_p5), %s1862_s7, 1024, %s774_s11, %s747_s25, %s1634_s22, %s1634_s22, %s1635_s29   ;;  %v637_v21 = vpop.f32.mrf.mxu2  ;;  %v1285_v22 = vpack.c.bf16 %v647_v20, %v645_v8 }
 0x135   : > { %v1275_v23 = vpack.c.bf16 %v637_v21, %v635_v15  ;;  %s1551_s8 = sshra.s32 %s812_s26, 4  ;;  %s1557_s5 = scalar_lea.hbm %s1964_s4, 128  ;;  %s1552_s8 = int_to_ptr.hbm [resolvable:$true] %s1551_s8 }
 0x136   : > { %1307 = vst [vmem:[%s1833_s23 + $0x38] sm:$0xff] %v1285_v22   ;;  %s1553_s9 = scalar_lea.hbm %s1552_s8, 64  ;;  %p1558_p0 = scmp.lt.s32.totalorder %s1552_s8, %s1964_s4 }
 0x137   : > { %1305 = vst [vmem:[%s1833_s23 + $0x28] sm:$0xff] %v1275_v23   ;;  %p1554_p10 = scmp.ne.s32.totalorder %s1552_s8, %s1553_s9  ;;  %p1559_p3 = scmp.lt.s32.totalorder %s1557_s5, %s1553_s9 }
 0x139   : > { %p1555_p12 = pnand %p1554_p10, %p1738_p5  ;;  %p1560_p7 = por %p1559_p3, %p1558_p0 }
 0x13b   : > { %p1556_p13 = pneg %p1555_p12 }
 0x13d   : > { %p1561_p9 = pnand %p1560_p7, %p1556_p13 }
 0x13f   : > { %1564 = shalt.err (!%p1561_p9)
}
 0x140   : > { %1340 = dma.vmem_to_hbm [thread:$0]  (%p1738_p5), %s810_s12, 1024, %s812_s26, %s1880_s27, %s1634_s22, %s1634_s22, %s1635_s29  }
 0x141 PF: > { %s826_s23 = sand.u32 1, %s1607_s15   ;;  %p1353_p2 = pnand %p982_p11, %p1708_p6 }
 0x142   : > { %s827_s25 = scalar_lea.sflag [#allocation4], %s826_s23 }
 0x143   : > { %p1354_p1 = pneg %p1353_p2 }
 0x145   : > { %1598 = dma.done.wait (%p1354_p1), %s827_s25, 1024  }
 0x146   : > { %1600 = vsyncadd (%p1354_p1), %s827_s25, 4294966272  ;;  %s1975_s6 = sadd.s32 4294967294, %s1627_s20  }
 0x147   : > { %s836_s10 = sand.u32 1, %s1975_s6  }
 0x148   : > { %s837_s21 = scalar_lea.sflag [#allocation9], %s836_s10 }
 0x149   : > { %1602 = dma.done.wait (%p1354_p1), %s837_s21, 2048  }
 0x14a   : > { %1604 = vsyncadd (%p1354_p1), %s837_s21, 4294965248  ;;  %s25_s20 = sadd.s32 1, %s1627_s20   ;;  %s1976_s24 = sld [smem:[#allocation15_spill]] }
 0x14b   : > { %p22_p5 = scmp.ge.s32.totalorder %s25_s20, 4   ;;  %s1977_s15 = smov %s1611_s16 }
 0x14c   : > { %s1978_s16 = smov %s1615_s17  ;;  %s1979_s17 = smov %s1747_s14 }
 0x14d   : > { %s1980_s18 = smov %s1623_s19  ;;  %24 = sbr.rel (!%p22_p5) target bundleno = 11 (0xb), region = 109 }
 0x150   : > { %s1981_s19 = smov %s1976_s24 }
 0x152   :  { %853 = vsyncpa [#allocation3], 1 }
 0x153   :  { %855 = vsyncpa [#allocation3 + $0x1], 1 }
 0x154   :  { %856 = vsyncpa [#allocation6], 1 }
 0x155   :  { %857 = vsyncpa [#allocation4], 1 }
 0x156   :  { %859 = vsyncpa [#allocation4 + $0x1], 1 }
 0x157   :  { %860 = vsyncpa [#allocation9], 1 }
 0x158   :  { %862 = vsyncpa [#allocation9 + $0x1], 1 }

</bundles_post_ra>
